<compile_context>
chip_gen: v7x
topology: tpu7x:2x2x1
jax: 0.10.0
libtpu: 0.0.40
codegen_flags: <defaults>
</compile_context>

<pallas_src>
import functools
import math

import jax
import jax.numpy as jnp
from jax import lax
from jax.experimental import pallas as pl
from jax.experimental.pallas import tpu as pltpu


def _round_up(x, m):
    return ((x + m - 1) // m) * m


# ---------------------------------------------------------------------------
# Streamed pooling kernel: mean over the lane (S) axis of a (n_tile, c_tile, S)
# native-dtype block, chunked f32 accumulation.
# ---------------------------------------------------------------------------
def _pool_kernel(x_ref, o_ref, *, s, inv_s, unroll_limit=64):
    nt, ct = x_ref.shape[0], x_ref.shape[1]
    num_full = s // 128
    rem = s - num_full * 128

    if num_full > 0:
        # First 128-lane slab seeds the f32 accumulator (VPU cast + adds only;
        # avoids materializing a full f32 copy of a multi-MiB bf16 block).
        acc = x_ref[:, :, 0:128].astype(jnp.float32)
        if num_full <= unroll_limit:
            # Static slices -> zero-cost views, aligned vector loads.
            for k in range(1, num_full):
                acc = acc + x_ref[:, :, k * 128:(k + 1) * 128].astype(jnp.float32)
        else:
            def body(k, a):
                off = pl.multiple_of(k * 128, 128)
                return a + x_ref[:, :, pl.ds(off, 128)].astype(jnp.float32)
            acc = lax.fori_loop(1, num_full, body, acc)
        total = jnp.sum(acc, axis=-1)                       # small XLU reduce
    else:
        total = jnp.zeros((nt, ct), jnp.float32)

    if rem > 0:                                             # masked tail slab
        tail = x_ref[:, :, num_full * 128:s].astype(jnp.float32)
        total = total + jnp.sum(tail, axis=-1)

    res = total * inv_s                                     # TRUE 1/S scale
    if nt == 1:
        o_ref[...] = res[:, None, :]                        # free layout
    else:
        # Per-row stores keep every write a (1, 1, c_tile) lane-dense slab.
        for r in range(nt):
            o_ref[r:r + 1, :, :] = res[r:r + 1, :][:, None, :]


def _global_avg_pool(x, *, target_block_bytes=4 * 1024 * 1024):
    """(N, C, *spatial) -> (N, C) f32 global average pool via Pallas."""
    n, c = x.shape[0], x.shape[1]
    s = math.prod(x.shape[2:])
    xf = x.reshape(n, c, s)                       # free reshape, native dtype

    itemsize = jnp.dtype(x.dtype).itemsize
    sub = max(8, 32 // itemsize)                  # sublane multiple: f32 8, bf16 16
    s_pad = _round_up(s, 128)                     # lanes the DMA actually moves
    row_bytes = s_pad * itemsize                  # PADDED bytes per channel row

    # Channel tile: full C, or a multiple of 128 (lane-dense output blocks).
    if _round_up(c, sub) * row_bytes <= target_block_bytes:
        c_tile = c
    else:
        c_budget = max(1, target_block_bytes // row_bytes)
        c_tile = max(128, (c_budget // 128) * 128)
        if c_tile >= c:
            c_tile = c
    c_blocks = pl.cdiv(c, c_tile)

    # Batch tile: pack several batch rows per block if budget remains.
    block_row_bytes = _round_up(c_tile, sub) * row_bytes
    n_tile = max(1, min(n, target_block_bytes // block_row_bytes))
    n_blocks = pl.cdiv(n, n_tile)

    # Guarantee >= 2 grid blocks so v7x's two TensorCores both get work.
    if n_blocks * c_blocks < 2:
        if n >= 2:
            n_tile = (n + 1) // 2
            n_blocks = pl.cdiv(n, n_tile)
        elif c >= 256:
            c_tile = _round_up((c + 1) // 2, 128)
            c_blocks = pl.cdiv(c, c_tile)

    # Explicit VMEM budget: double-buffered input blocks + f32 accumulator +
    # double-buffered output blocks + headroom (padded footprints throughout).
    block_bytes = n_tile * _round_up(c_tile, sub) * row_bytes
    acc_bytes = n_tile * _round_up(c_tile, 8) * 128 * 4
    out_bytes = 2 * n_tile * 8 * _round_up(c_tile, 128) * 4
    vmem_limit = max(16 * 1024 * 1024,
                     2 * block_bytes + acc_bytes + out_bytes + (4 << 20))
    vmem_limit = min(vmem_limit, 48 * 1024 * 1024)

    # NOTE(tuning): sweep pipeline_mode=pl.Buffered(3) on the in_spec once block
    # sizes are frozen (compute per block is ~0, pipeline is back-to-back DMA).
    pooled = pl.pallas_call(
        functools.partial(_pool_kernel, s=s, inv_s=float(1.0 / s)),
        out_shape=jax.ShapeDtypeStruct((n, 1, c), jnp.float32),
        grid_spec=pltpu.PrefetchScalarGridSpec(
            num_scalar_prefetch=0,
            grid=(n_blocks, c_blocks),
            in_specs=[pl.BlockSpec((n_tile, c_tile, s), lambda i, j: (i, j, 0))],
            out_specs=pl.BlockSpec((n_tile, 1, c_tile), lambda i, j: (i, 0, j)),
        ),
        compiler_params=pltpu.CompilerParams(
            dimension_semantics=("parallel", "parallel"),
            vmem_limit_bytes=int(vmem_limit)),
    )(xf)
    return pooled.reshape(n, c)


# ---------------------------------------------------------------------------
# Tiny FC kernel (runs once): y = p @ w^T + b, weight in PyTorch (K, C) layout,
# native dtype (no transpose, no upcast -> bf16 weights hit the MXU directly).
# ---------------------------------------------------------------------------
def _fc_kernel(p_ref, w_ref, b_ref, o_ref):
    w = w_ref[...]
    p = p_ref[...].astype(w.dtype)
    acc = lax.dot_general(p, w, (((1,), (1,)), ((), ())),
                          preferred_element_type=jnp.float32)
    o_ref[...] = (acc + b_ref[...].astype(jnp.float32)).astype(o_ref.dtype)


def slowfast_head(x1, x2, w, b):
    """
    x1: (N, C1, T1, H1, W1)   x2: (N, C2, T2, H2, W2)   (any float dtype)
    w : (num_classes, C1 + C2)  (PyTorch nn.Linear layout, any float dtype)
    b : (num_classes,)
    returns (N, num_classes) float32
    """
    n = x1.shape[0]
    k = w.shape[0]

    # Streamed, pipelined global average pools (the HBM-bound part).
    p1 = _global_avg_pool(x1)                     # (N, C1) f32
    p2 = _global_avg_pool(x2)                     # (N, C2) f32

    # Tiny pooled-feature concat (KB scale); dropout is identity at inference.
    p = jnp.concatenate([p1, p2], axis=1)         # (N, C1+C2) f32
    b2d = b.reshape(1, k)

    vmem = pl.BlockSpec(memory_space=pltpu.MemorySpace.VMEM)
    return pl.pallas_call(
        _fc_kernel,
        out_shape=jax.ShapeDtypeStruct((n, k), jnp.float32),
        in_specs=[vmem, vmem, vmem],
        out_specs=vmem,
    )(p, w, b2d)


def _reference(x1, x2, w, b):
    n, c1 = x1.shape[0], x1.shape[1]
    c2 = x2.shape[1]
    p1 = jnp.mean(x1.reshape(n, c1, -1).astype(jnp.float32), axis=-1)
    p2 = jnp.mean(x2.reshape(n, c2, -1).astype(jnp.float32), axis=-1)
    feat = jnp.concatenate([p1, p2], axis=1)
    return feat @ w.T.astype(jnp.float32) + b.astype(jnp.float32)


if __name__ == "__main__":
    key = jax.random.PRNGKey(0)
    k_x1, k_x2, k_w, k_b = jax.random.split(key, 4)

    # Small SlowFast-like shapes: slow path (few frames, more channels),
    # fast path (more frames, fewer channels).
    N, C1, T1, H1, W1 = 2, 8, 4, 8, 8
    C2, T2, H2, W2 = 4, 8, 8, 8
    NUM_CLASSES = 16

    x1 = jax.random.normal(k_x1, (N, C1, T1, H1, W1), dtype=jnp.float32)
    x2 = jax.random.normal(k_x2, (N, C2, T2, H2, W2), dtype=jnp.float32)

    # Deterministic nn.Linear-style init: U(-1/sqrt(fan_in), 1/sqrt(fan_in)).
    fan_in = C1 + C2
    bound = 1.0 / (fan_in ** 0.5)
    w = jax.random.uniform(k_w, (NUM_CLASSES, fan_in), jnp.float32, -bound, bound)
    b = jax.random.uniform(k_b, (NUM_CLASSES,), jnp.float32, -bound, bound)

    # f32 activations / f32 weights.
    out = jax.block_until_ready(slowfast_head(x1, x2, w, b))
    ref = _reference(x1, x2, w, b)
    assert out.shape == (N, NUM_CLASSES)
    assert jnp.allclose(out, ref, atol=1e-5, rtol=1e-5)

    # Native bf16 activations: no wrapper-side f32 copy, cast happens in-kernel.
    x1_bf = x1.astype(jnp.bfloat16)
    x2_bf = x2.astype(jnp.bfloat16)
    out_bf = jax.block_until_ready(slowfast_head(x1_bf, x2_bf, w, b))
    ref_bf = _reference(x1_bf, x2_bf, w, b)
    assert jnp.allclose(out_bf, ref_bf, atol=1e-2, rtol=1e-2)

    # Native bf16 weights: FC kernel feeds bf16 straight into the MXU.
    w_bf = w.astype(jnp.bfloat16)
    out_bfw = jax.block_until_ready(slowfast_head(x1_bf, x2_bf, w_bf, b))
    ref_bfw = _reference(x1_bf, x2_bf, w_bf, b)
    assert jnp.allclose(out_bfw, ref_bfw, atol=2e-2, rtol=2e-2)

    print("KERNEL_OK")
</pallas_src>

<mosaic_0001>
module attributes {stable_mosaic.version = 11 : i64} {
  func.func @_pool_kernel(%arg0: i32, %arg1: i32, %arg2: memref<1x8x256xf32, #tpu.memory_space<vmem>>, %arg3: memref<1x1x8xf32, #tpu.memory_space<vmem>>) attributes {dimension_semantics = [#tpu.dimension_semantics<parallel>, #tpu.dimension_semantics<parallel>], iteration_bounds = array<i64: 2, 1>, scalar_prefetch = 0 : i64, scratch_operands = 0 : i64, tpu.core_type = #tpu.core_type<tc>, window_params = [{transform_indices = @transform_0, window_bounds = array<i64: 1, 8, 256>}, {transform_indices = @transform_1, window_bounds = array<i64: 1, 1, 8>}]} {
    %c0 = arith.constant 0 : index
    %c0_0 = arith.constant 0 : index
    %c0_1 = arith.constant 0 : index
    %0 = vector.load %arg2[%c0, %c0_0, %c0_1] : memref<1x8x256xf32, #tpu.memory_space<vmem>>, vector<1x8x128xf32>
    %c0_2 = arith.constant 0 : index
    %c0_3 = arith.constant 0 : index
    %c128 = arith.constant 128 : index
    %1 = vector.load %arg2[%c0_2, %c0_3, %c128] : memref<1x8x256xf32, #tpu.memory_space<vmem>>, vector<1x8x128xf32>
    %2 = arith.addf %0, %1 : vector<1x8x128xf32>
    %cst = arith.constant dense<0.000000e+00> : vector<1x8xf32>
    %3 = vector.multi_reduction <add>, %2, %cst [2] : vector<1x8x128xf32> to vector<1x8xf32>
    %cst_4 = arith.constant 3.906250e-03 : f32
    %4 = vector.broadcast %cst_4 : f32 to vector<1x8xf32>
    %5 = arith.mulf %3, %4 : vector<1x8xf32>
    %6 = vector.shape_cast %5 : vector<1x8xf32> to vector<1x1x8xf32>
    %c0_5 = arith.constant 0 : index
    %c0_6 = arith.constant 0 : index
    %c0_7 = arith.constant 0 : index
    %7 = vector.load %arg3[%c0_5, %c0_6, %c0_7] : memref<1x1x8xf32, #tpu.memory_space<vmem>>, vector<1x1x8xf32>
    tpu.vector_store %arg3[%c0_5, %c0_6, %c0_7], %6 {strides = array<i32>} : memref<1x1x8xf32, #tpu.memory_space<vmem>>, vector<1x1x8xf32>,
    return
  }
  func.func @transform_0(%arg0: i32, %arg1: i32) -> (i32, i32, i32) {
    %c0_i32 = arith.constant 0 : i32
    %c0_i32_0 = arith.constant 0 : i32
    return %arg0, %arg1, %c0_i32 : i32, i32, i32
  }
  func.func @transform_1(%arg0: i32, %arg1: i32) -> (i32, i32, i32) {
    %c0_i32 = arith.constant 0 : i32
    %c0_i32_0 = arith.constant 0 : i32
    return %arg0, %c0_i32, %arg1 : i32, i32, i32
  }
}

</mosaic_0001>

<bundles_post_ra>
// kernel: tpu_custom_call.1
= control target key start
LH: loop header
LB: loop body
LE: loop exit
PB: predicated region body
PF: predicated region fallthrough
CT: control target
= control target key end

     0   :  { %6 = vsyncpa [#allocation3], 0  ;;  %s632_s0 = inlined_call_operand.hbm [shape: f32[2,8,256], index: 0, kind: input, shape index: {}]   ;;  %s633_s1 = inlined_call_operand.hbm [shape: f32[2,1,8], index: 1, kind: output, shape index: {}]  }
   0x1   :  { %8 = vsyncpa [#allocation3 + $0x1], 0 }
   0x2   :  { %9 = vsyncpa [#allocation4], 0 }
   0x3   :  { %11 = vsyncpa [#allocation4 + $0x1], 0  ;;  %s459_s6 = smov 0   ;;  %s461_s7 = smov 0  }
   0x4   :  { %s463_s8 = smov 0   ;;  %s465_s9 = smov 0  }
   0x5   :  { %s467_s10 = smov 0   ;;  %s469_s11 = smov 0  }
   0x6 LB: > { %s258_s12 = sadd.s32 4294967295, %s445_s11   ;;  %s259_s13 = sadd.s32 4294967294, %s445_s11   ;;  %s445_s11 = sphi %s469_s11, %s17_s11   ;;  %s441_s10 = sphi %s467_s10, %s649_s10   ;;  %s437_s9 = sphi %s465_s9, %s648_s9   ;;  %s433_s8 = sphi %s463_s8, %s647_s8   ;;  %s429_s7 = sphi %s461_s7, %s646_s7   ;;  %s425_s6 = sphi %s459_s6, %s645_s6  }
   0x7   : > { %s29_s14 = sadd.s32 1, %s441_s10  ;;  %s38_s15 = sadd.s32 1, %s433_s8 }
   0x8   : > { %p31_p0 = scmp.ge.s32.totalorder %s29_s14, 2  ;;  %p45_p1 = scmp.ne.s32.totalorder %s433_s8, %s429_s7 }
   0x9   : > { %p46_p2 = scmp.eq.s32.totalorder %s445_s11, 0  ;;  %p51_p3 = scmp.ne.s32.totalorder %s429_s7, %s425_s6 }
   0xa   : > { %s651_s14 = smov (%p31_p0, %s29_s14), 0  ;;  %p52_p5 = scmp.eq.s32.totalorder %s258_s12, 0 }
   0xb   : > { %p500_p4 = por %p46_p2, %p45_p1  ;;  %s33_s17 = ssub.s32 %s441_s10, %s651_s14 }
   0xc   : > { %p77_p6 = scmp.eq.s32.totalorder %s258_s12, 1  ;;  %p36_p7 = scmp.eq.s32.totalorder %s33_s17, 0 }
   0xd   : > { %p506_p8 = por %p52_p5, %p51_p3  ;;  %p83_p10 = scmp.eq.s32.totalorder %s259_s13, 1 }
   0xe   : > { %p510_p9 = por %p77_p6, %p45_p1  ;;  %p283_p13 = scmp.lt.s32.totalorder %s445_s11, 2 }
   0xf   : > { %s515_s20 = scalar_select %p36_p7, %s433_s8, %s38_s15  }
  0x10   : > { %s637_s19 = scalar_select %p510_p9, 1, 0 }
  0x11   : > { %p517_p11 = por %p83_p10, %p51_p3  ;;  %s103_s22 = sand.u32 1, %s433_s8  }
  0x12   : > { %s262_s23 = sshll.u32 %s103_s22, 4  ;;  %s270_s24 = sshll.u32 %s441_s10, 8 }
  0x13   : > { %s638_s21 = scalar_select %p517_p11, 1, 0 }
  0x14   : > { %s528_s27 = scalar_lea.hbm %s632_s0, %s270_s24  ;;  %s107_s28 = scalar_lea.vmem [#allocation2], %s262_s23 }
  0x15   : > { %s117_s29 = sshll.u32 %s107_s28, 4  ;;  %p534_p0 = pnand %p283_p13, %p500_p4  ;;  %s530_s29 = int_to_ptr.vmem [resolvable:$true] %s117_s29 }
  0x16   : > { %s104_s2 = scalar_lea.sflag [#allocation3], %s103_s22  ;;  %s333_s3 = scalar_lea.hbm %s528_s27, 256 }
  0x17   : > { %p334_p3 = scmp.ne.s32.totalorder %s528_s27, %s333_s3  ;;  %p335_p5 = pneg %p534_p0 }
  0x18   : > { %s338_s12 = scalar_lea.hbm %s632_s0, 512  ;;  %p339_p4 = scmp.lt.u32.totalorder %s528_s27, %s632_s0 }
  0x19   : > { %p336_p6 = pnand %p335_p5, %p334_p3  ;;  %p340_p10 = scmp.lt.u32.totalorder %s338_s12, %s333_s3 }
  0x1a   : > { %p342_p12 = scmp.lt.u32.totalorder %s333_s3, %s528_s27 }
  0x1b   : > { %p337_p7 = pneg %p336_p6  ;;  %p341_p13 = por %p340_p10, %p339_p4 }
  0x1d   : > { %p343_p1 = por %p342_p12, %p341_p13 }
  0x1f   : > { %p344_p2 = pnand %p343_p1, %p337_p7 }
  0x21   : > { %347 = shalt.err (!%p344_p2)
}
  0x22   : > { %s348_s16 = scalar_lea.vmem %s530_s29, 256  ;;  %s447_s17 = smov [#allocation2]  }
  0x23   : > { %p349_p3 = scmp.ne.s32.totalorder %s530_s29, %s348_s16  ;;  %s353_s22 = sshll.u32 %s447_s17, 4  ;;  %s354_s22 = int_to_ptr.vmem [resolvable:$false] %s353_s22 }
  0x24   : > { %s355_s23 = scalar_lea.vmem %s354_s22, 512  ;;  %p356_p9 = scmp.lt.s32.totalorder %s530_s29, %s354_s22 }
  0x25   : > { %p351_p6 = pnand %p349_p3, %p335_p5  ;;  %p357_p4 = scmp.lt.s32.totalorder %s355_s23, %s348_s16 }
  0x27   : > { %p352_p11 = pneg %p351_p6  ;;  %p358_p10 = por %p357_p4, %p356_p9 }
  0x29   : > { %p359_p12 = pnand %p358_p10, %p352_p11 }
  0x2b   : > { %362 = shalt.err (!%p359_p12)
}
  0x2c   : > { %278 = dma.hbm_to_vmem [thread:$0]  (!%p534_p0), %s528_s27, 256, %s530_s29, %s104_s2  }
  0x2d   : > { %p640_p1 = scmp.lt.s32.totalorder %s445_s11, 3  ;;  %p641_p2 = scmp.ge.s32.totalorder %s445_s11, 1 }
  0x2f   : > { %p123_p5 = pnand %p641_p2, %p640_p1 }
  0x30   : > { %s570_s24 = sand.u32 (!%p123_p5), 1, %s429_s7  }
  0x31   : > { %126 = sbr.rel (%p123_p5) target bundleno = 220 (0xdc), region = 24  ;;  %s266_s25 = sshll.u32 (!%p123_p5), %s570_s24, 4 }
  0x32   : > { %s129_s26 = scalar_lea.sflag (!%p123_p5), [#allocation3], %s570_s24  ;;  %s132_s28 = scalar_lea.vmem (!%p123_p5), [#allocation2], %s266_s25 }
  0x38   : > { %416 = dma.done.wait (%p506_p8), %s129_s26, 256  }
  0x39   : > { %418 = vsyncadd (%p506_p8), %s129_s26, 4294967040  ;;  %v150_v0 = vld [vmem:[%s132_s28] sm:$0xff]  ;;  %v151_v1 = vld [vmem:[%s132_s28 + $0x8] sm:$0xff]  ;;  %v157_v3 = vlaneseq  ;;  %s267_s27 = sshll.u32 %s437_s9, 4  ;;  %s149_s29 = scalar_lea.vmem [#allocation5], %s570_s24  ;;  %vm164_vm0 = vcmask 57344  }
  0x3a   : > { %v152_v2 = vadd.f32 %v151_v1, %v150_v0  ;;  %s180_s30 = sshll.u32 %s149_s29, 4  ;;  %s583_s3 = scalar_lea.hbm %s633_s1, %s267_s27  ;;  %s585_s30 = int_to_ptr.vmem [resolvable:$true] %s180_s30 }
  0x3b   : > { %v158_v4 = vand.u32 127, %v157_v3  ;;  %v160_v5 = vshrl.u32 %v157_v3, 7  ;;  %s167_s4 = scalar_lea.sflag [#allocation4], %s570_s24  ;;  %s363_s5 = scalar_lea.vmem %s585_s30, 16 }
  0x3c   : > { %153 = vadd.xlane.f32.xlu0 %v152_v2  ;;  %p364_p8 = scmp.ne.s32.totalorder %s585_s30, %s363_s5  ;;  %p642_p9 = scmp.ne.s32.totalorder %s637_s19, 0 }
  0x3d   : > { %v161_v6 = vsub.s32 %v158_v4, %v160_v5  ;;  %s448_s9 = smov [#allocation5]  }
  0x3e   : > { %p365_p11 = pnand %p364_p8, %p642_p9  ;;  %s367_s12 = sshll.u32 %s448_s9, 4  ;;  %s368_s12 = int_to_ptr.vmem [resolvable:$false] %s367_s12 }
  0x3f   : > { %s369_s13 = scalar_lea.vmem %s368_s12, 32  ;;  %p370_p7 = scmp.lt.s32.totalorder %s585_s30, %s368_s12 }
  0x40   : > { %p366_p0 = pneg %p365_p11  ;;  %p371_p13 = scmp.lt.s32.totalorder %s369_s13, %s363_s5 }
  0x42   : > { %p372_p3 = por %p371_p13, %p370_p7 }
  0x44   : > { %p373_p6 = pnand %p372_p3, %p366_p0 }
  0xc9   : > { %v154_v7 = vpop.xlane.xlu0 %153 }
  0xca   : > { %v155_v8 = vmul.f32 0.00390625, %v154_v7 }
  0xcc   : > { %v162_v9 = vrot.slane %v155_v8, %v161_v6 }
  0xce   : > { %165 = vst.msk [vmem:[%s149_s29] sm:$0x1] %vm164_vm0, %v162_v9 }
  0xcf   : > { %376 = shalt.err (!%p373_p6)
}
  0xd0   : > { %s377_s15 = scalar_lea.hbm %s583_s3, 16  ;;  %s381_s22 = scalar_lea.hbm %s633_s1, 32 }
  0xd1   : > { %p378_p4 = scmp.ne.s32.totalorder %s583_s3, %s377_s15  ;;  %p382_p1 = scmp.lt.u32.totalorder %s583_s3, %s633_s1 }
  0xd2   : > { %p383_p2 = scmp.lt.u32.totalorder %s381_s22, %s377_s15  ;;  %p385_p8 = scmp.lt.u32.totalorder %s377_s15, %s583_s3 }
  0xd3   : > { %p379_p10 = pnand %p378_p4, %p642_p9 }
  0xd4   : > { %p384_p5 = por %p383_p2, %p382_p1 }
  0xd5   : > { %p380_p12 = pneg %p379_p10 }
  0xd6   : > { %p386_p11 = por %p385_p8, %p384_p5 }
  0xd8   : > { %p387_p0 = pnand %p386_p11, %p380_p12 }
  0xda   : > { %390 = shalt.err (!%p387_p0)
}
  0xdb   : > { %273 = dma.vmem_to_hbm [thread:$0]  (%p642_p9), %s585_s30, 16, %s583_s3, %s167_s4  }
  0xdc PF: > { %s192_s25 = sand.u32 1, %s425_s6   ;;  %p643_p7 = scmp.ne.s32.totalorder %s638_s21, 0 }
  0xdd   : > { %p644_p13 = scmp.ge.s32.totalorder %s445_s11, 2  ;;  %s193_s26 = scalar_lea.sflag [#allocation4], %s192_s25 }
  0xdf   : > { %p280_p3 = pnand %p644_p13, %p643_p7 }
  0xe1   : > { %420 = dma.done.wait (!%p280_p3), %s193_s26, 16  }
  0xe2   : > { %422 = vsyncadd (!%p280_p3), %s193_s26, 4294967280  ;;  %s17_s11 = sadd.s32 1, %s445_s11   ;;  %s645_s6 = smov %s429_s7 }
  0xe3   : > { %p14_p6 = scmp.ge.s32.totalorder %s17_s11, 4   ;;  %s646_s7 = smov %s433_s8 }
  0xe4   : > { %s647_s8 = smov %s515_s20  ;;  %s648_s9 = smov %s441_s10 }
  0xe5   : > { %s649_s10 = smov %s651_s14  ;;  %16 = sbr.rel (!%p14_p6) target bundleno = 6 (0x6), region = 69 }
  0xec   :  { %197 = vsyncpa [#allocation3], 1 }
  0xed   :  { %199 = vsyncpa [#allocation3 + $0x1], 1 }
  0xee   :  { %200 = vsyncpa [#allocation4], 1 }
  0xef   :  { %202 = vsyncpa [#allocation4 + $0x1], 1 }

</bundles_post_ra>
